<compile_context>
chip_gen: v7x
topology: tpu7x:2x2x1
jax: 0.10.0
libtpu: 0.0.40
codegen_flags: <defaults>
</compile_context>

<pallas_src>
import functools
import math

import jax
import jax.numpy as jnp
from jax import lax
from jax.experimental import pallas as pl
from jax.experimental.pallas import tpu as pltpu

LANE = 128
_TK_MAX = 8192  # max lanes per k-step in the streaming path (multiple of 128)


def _round_up(a: int, b: int) -> int:
    return -(-a // b) * b


def _vmem_capacity_bytes() -> int:
    try:
        return int(pltpu.get_tpu_info().vmem_capacity_bytes)
    except Exception:
        return 64 * 1024 * 1024  # conservative: v7x per-TensorCore VMEM


# --------------------------------------------------------------------------
# Streaming path (T >= 128): rows on sublanes, T chunked on lanes.
# --------------------------------------------------------------------------
def _tda_stream_kernel(x_ref, w_ref, o_ref, acc_ref, *, tk: int, grid_k: int,
                       t_total: int, max_value: float, scale_out: float,
                       compute_dtype, w_hoisted: bool):
    k = pl.program_id(1)

    @pl.when(k == 0)
    def _init():
        acc_ref[...] = jnp.zeros_like(acc_ref)

    x = x_ref[...].astype(compute_dtype)                    # (TR, tk)
    if w_hoisted:
        # Full weights row lives in VMEM once; slice this k-chunk (aligned).
        w = w_ref[:, pl.ds(pl.multiple_of(k * tk, LANE), tk)]   # (1, tk)
    else:
        w = w_ref[...]                                       # (1, tk)

    y = jnp.clip(x * w, 0.0, max_value)                      # VPU (bf16 native)

    # Mask lanes beyond the true T in the (possibly partial) last k-block.
    # Relying on w == 0 alone is unsafe: garbage OOB lanes could be Inf/NaN.
    if t_total % tk != 0:
        last_valid = t_total - (grid_k - 1) * tk
        lane = lax.broadcasted_iota(jnp.int32, y.shape, 1)
        limit = jnp.where(k == grid_k - 1, last_valid, tk)
        y = jnp.where(lane < limit, y, jnp.zeros_like(y))

    # Lane-dense accumulation: full-vreg VALU adds into a (TR, 128) f32
    # accumulator.  The 128 -> 1 XLU reduce is deferred to the epilogue.
    acc = acc_ref[...]
    for j in range(tk // LANE):
        acc = acc + y[:, j * LANE:(j + 1) * LANE].astype(jnp.float32)
    acc_ref[...] = acc

    @pl.when(k == grid_k - 1)
    def _epilogue():
        res = jnp.sum(acc_ref[...], axis=-1, keepdims=True)  # (TR, 1)
        if scale_out != 1.0:
            res = res * scale_out
        o_ref[...] = res.astype(o_ref.dtype)


def _tda_stream_forward(x2d, w_t, *, R, T, max_value, scale_out, compute_dtype,
                        target_tile_bytes, vmem_limit, tk_max):
    itemsize = jnp.dtype(x2d.dtype).itemsize
    tk = min(_round_up(T, LANE), max(LANE, _round_up(tk_max, LANE)))
    grid_k = (T + tk - 1) // tk
    tp_w = grid_k * tk

    # Only the tiny weights vector is ever padded — never x.
    w_pad = jnp.pad(w_t.astype(compute_dtype), (0, tp_w - T)).reshape(1, tp_w)
    w_hoisted = tp_w * jnp.dtype(compute_dtype).itemsize <= 4 * 1024 * 1024

    # Row tile: target bytes for (2x double-buffered x tile + f32 accumulator).
    tr = target_tile_bytes // max(1, tk * itemsize + 2 * LANE)
    tr = max(8, (tr // 8) * 8)
    tr = min(tr, _round_up(R, 8))

    kernel = functools.partial(
        _tda_stream_kernel, tk=tk, grid_k=grid_k, t_total=T,
        max_value=float(max_value), scale_out=float(scale_out),
        compute_dtype=compute_dtype, w_hoisted=w_hoisted)

    if w_hoisted:
        w_spec = pl.BlockSpec((1, tp_w), lambda i, k: (0, 0))   # DMA'd once
    else:
        w_spec = pl.BlockSpec((1, tk), lambda i, k: (0, k))

    out2d = pl.pallas_call(
        kernel,
        out_shape=jax.ShapeDtypeStruct((R, 1), jnp.float32),
        grid_spec=pltpu.PrefetchScalarGridSpec(
            num_scalar_prefetch=0,
            grid=(pl.cdiv(R, tr), grid_k),
            in_specs=[
                pl.BlockSpec((tr, tk), lambda i, k: (i, k)),    # x tile
                w_spec,                                         # weights
            ],
            out_specs=pl.BlockSpec((tr, 1), lambda i, k: (i, 0)),
            scratch_shapes=[pltpu.VMEM((tr, LANE), jnp.float32)],
        ),
        compiler_params=pltpu.CompilerParams(
            dimension_semantics=("parallel", "arbitrary"),
            vmem_limit_bytes=vmem_limit,
        ),
    )(x2d, w_pad)
    return out2d[:, 0]


# --------------------------------------------------------------------------
# Packed small-T path (T < 128): pack G rows per lane-row; segmented per-row
# sums on the MXU with a 0/1 segment-indicator matrix.
# --------------------------------------------------------------------------
def _tda_packed_kernel(x_ref, w_ref, s_ref, o_ref, *, max_value: float,
                       scale_out: float, compute_dtype):
    x = x_ref[...].astype(compute_dtype)                 # (TR, G*T)
    w = w_ref[...]                                       # (1, G*T)
    y = jnp.clip(x * w, 0.0, max_value)
    # Segmented row sums via MXU: s_ref is the (G*T, G) 0/1 indicator.
    o = jnp.dot(y, s_ref[...], preferred_element_type=jnp.float32,
                precision=lax.Precision.HIGHEST)
    if scale_out != 1.0:
        o = o * scale_out
    o_ref[...] = o.astype(o_ref.dtype)


def _tda_packed_forward(x2d, w_t, *, R, T, max_value, scale_out, compute_dtype,
                        target_tile_bytes, vmem_limit):
    # Pack G consecutive rows onto one lane-row so each vreg carries up to
    # ~512 useful lanes instead of T (< 128).  The reshape is free (contiguous).
    g_target = max(1, 512 // T)
    G = 1
    for g in range(min(g_target, R), 0, -1):
        if R % g == 0:
            G = g
            break
    # TODO(synk): if R has no divisor <= 512//T (e.g. prime R), we fall back to
    # G == 1 and accept low lane occupancy for this small-T input.
    rows_p = R // G
    width = G * T

    xp = x2d.reshape(rows_p, width)
    wp = jnp.tile(w_t, (G,)).reshape(1, width).astype(compute_dtype)
    seg = jnp.repeat(jnp.arange(G, dtype=jnp.int32), T)
    s_mat = (seg[:, None] == jnp.arange(G, dtype=jnp.int32)[None, :]
             ).astype(compute_dtype)                     # (G*T, G)

    itemsize = jnp.dtype(xp.dtype).itemsize
    tr = target_tile_bytes // max(1, width * itemsize)
    tr = max(8, (tr // 8) * 8)
    tr = min(tr, _round_up(rows_p, 8))

    kernel = functools.partial(_tda_packed_kernel, max_value=float(max_value),
                               scale_out=float(scale_out),
                               compute_dtype=compute_dtype)

    out_p = pl.pallas_call(
        kernel,
        out_shape=jax.ShapeDtypeStruct((rows_p, G), jnp.float32),
        grid_spec=pltpu.PrefetchScalarGridSpec(
            num_scalar_prefetch=0,
            grid=(pl.cdiv(rows_p, tr),),
            in_specs=[
                pl.BlockSpec((tr, width), lambda i: (i, 0)),   # packed x tile
                pl.BlockSpec((1, width), lambda i: (0, 0)),    # tiled weights
                pl.BlockSpec((width, G), lambda i: (0, 0)),    # segment matrix
            ],
            out_specs=pl.BlockSpec((tr, G), lambda i: (i, 0)),
        ),
        compiler_params=pltpu.CompilerParams(
            dimension_semantics=("parallel",),
            vmem_limit_bytes=vmem_limit,
        ),
    )(xp, wp, s_mat)
    return out_p.reshape(R)


# --------------------------------------------------------------------------
# Public wrapper (mirrors TDAV2.forward).
# --------------------------------------------------------------------------
def tdav2_forward(x, *, time_window: float, max_value: float,
                  scaling_factor: float, op: str = "mean", tk_max: int = _TK_MAX):
    """x: (B, C, T) -> (B, C) float32."""
    if op not in ("sum", "mean"):
        raise ValueError('op must be either "sum" or "mean"')
    B, C, T = x.shape
    R = B * C

    # bf16 inputs: do the elementwise stage in bf16 (native on v6e/v7x),
    # accumulate in f32.  Everything else computes in f32.
    compute_dtype = jnp.bfloat16 if x.dtype == jnp.bfloat16 else jnp.float32

    # Decay buffer (matches torch.arange(time_window)), length-adjusted to T.
    n_w = int(math.ceil(float(time_window)))
    t_idx = jnp.arange(n_w, dtype=jnp.float32)
    w_full = (scaling_factor * jnp.exp(-t_idx / time_window)).astype(jnp.float32)
    if T > n_w:
        w_t = jnp.concatenate([w_full, jnp.zeros((T - n_w,), jnp.float32)])
    else:
        w_t = w_full[:T]

    scale_out = (1.0 / float(T)) if op == "mean" else 1.0

    x2d = x.reshape(R, T)                      # free reshape, no copy

    vmem_cap = _vmem_capacity_bytes()
    target_tile_bytes = min(vmem_cap // 5, 24 * 1024 * 1024)
    vmem_limit = int(min(vmem_cap * 3 // 4, 96 * 1024 * 1024))

    common = dict(R=R, T=T, max_value=max_value, scale_out=scale_out,
                  compute_dtype=compute_dtype,
                  target_tile_bytes=target_tile_bytes, vmem_limit=vmem_limit)

    if T < LANE:
        flat = _tda_packed_forward(x2d, w_t, **common)
    else:
        flat = _tda_stream_forward(x2d, w_t, tk_max=tk_max, **common)
    return flat.reshape(B, C)


# --------------------------------------------------------------------------
# Pure-JAX reference mirroring the PyTorch forward.
# --------------------------------------------------------------------------
def _reference(x, *, time_window, max_value, scaling_factor, op):
    T = x.shape[2]
    n_w = int(math.ceil(float(time_window)))
    t = jnp.arange(n_w, dtype=jnp.float32)
    w = scaling_factor * jnp.exp(-t / time_window)
    if T > n_w:
        w = jnp.concatenate([w, jnp.zeros((T - n_w,), jnp.float32)])
    else:
        w = w[:T]
    y = jnp.clip(x.astype(jnp.float32) * w.reshape(1, 1, T), 0.0, max_value)
    return jnp.mean(y, axis=2) if op == "mean" else jnp.sum(y, axis=2)


if __name__ == "__main__":
    key = jax.random.PRNGKey(0)
    k1, k2 = jax.random.split(key)
    ok = True

    # Small-T input (packed / MXU segmented-sum path).
    x_small = jax.random.normal(k1, (2, 4, 8), dtype=jnp.float32)
    # Larger-T input (streaming path, ragged T handled by in-kernel mask).
    x_big = jax.random.normal(k2, (2, 4, 300), dtype=jnp.float32)

    cases = [
        (x_small, dict(time_window=8.0, max_value=1.5, scaling_factor=2.0)),
        (x_big, dict(time_window=64.0, max_value=1.0, scaling_factor=1.3)),
    ]
    for x_in, params in cases:
        for op in ("mean", "sum"):
            out = jax.block_until_ready(tdav2_forward(x_in, op=op, **params))
            ref = _reference(x_in, op=op, **params)
            assert out.shape == x_in.shape[:2]
            if not jnp.allclose(out, ref, atol=1e-3, rtol=1e-3):
                ok = False
                print("MISMATCH", x_in.shape, op,
                      float(jnp.max(jnp.abs(out - ref))))

    # Exercise the multi-k-step streaming accumulator with a tiny k-chunk.
    params = dict(time_window=64.0, max_value=1.0, scaling_factor=1.3)
    out = jax.block_until_ready(
        tdav2_forward(x_big, op="mean", tk_max=128, **params))
    ref = _reference(x_big, op="mean", **params)
    if not jnp.allclose(out, ref, atol=1e-3, rtol=1e-3):
        ok = False
        print("MISMATCH multi-k", float(jnp.max(jnp.abs(out - ref))))

    if ok:
        print("KERNEL_OK")
</pallas_src>

<mosaic_0001>
module attributes {stable_mosaic.version = 11 : i64} {
  func.func @_tda_packed_kernel(%arg0: i32, %arg1: memref<8x64xf32, #tpu.memory_space<vmem>>, %arg2: memref<1x64xf32, #tpu.memory_space<vmem>>, %arg3: memref<64x8xf32, #tpu.memory_space<vmem>>, %arg4: memref<8x8xf32, #tpu.memory_space<vmem>>) attributes {dimension_semantics = [#tpu.dimension_semantics<parallel>], iteration_bounds = array<i64: 1>, scalar_prefetch = 0 : i64, scratch_operands = 0 : i64, tpu.core_type = #tpu.core_type<tc>, window_params = [{transform_indices = @transform_0, window_bounds = array<i64: 8, 64>}, {pipeline_mode = #tpu.pipeline_mode<synchronous>, transform_indices = @transform_1, window_bounds = array<i64: 1, 64>}, {pipeline_mode = #tpu.pipeline_mode<synchronous>, transform_indices = @transform_2, window_bounds = array<i64: 64, 8>}, {transform_indices = @transform_3, window_bounds = array<i64: 8, 8>}]} {
    %c0 = arith.constant 0 : index
    %c0_0 = arith.constant 0 : index
    %0 = vector.load %arg1[%c0, %c0_0] : memref<8x64xf32, #tpu.memory_space<vmem>>, vector<8x64xf32>
    %c0_1 = arith.constant 0 : index
    %c0_2 = arith.constant 0 : index
    %1 = vector.load %arg2[%c0_1, %c0_2] : memref<1x64xf32, #tpu.memory_space<vmem>>, vector<1x64xf32>
    %2 = vector.broadcast %1 : vector<1x64xf32> to vector<8x64xf32>
    %3 = arith.mulf %0, %2 : vector<8x64xf32>
    %cst = arith.constant 0.000000e+00 : f32
    %cst_3 = arith.constant 1.500000e+00 : f32
    %4 = vector.broadcast %cst : f32 to vector<8x64xf32>
    %5 = arith.maximumf %4, %3 : vector<8x64xf32>
    %6 = vector.broadcast %cst_3 : f32 to vector<8x64xf32>
    %7 = arith.minimumf %6, %5 : vector<8x64xf32>
    %c0_4 = arith.constant 0 : index
    %c0_5 = arith.constant 0 : index
    %8 = vector.load %arg3[%c0_4, %c0_5] : memref<64x8xf32, #tpu.memory_space<vmem>>, vector<64x8xf32>
    %cst_6 = arith.constant dense<0.000000e+00> : vector<8x8xf32>
    %9 = tpu.matmul %7, %8, %cst_6 {dimension_numbers = #tpu.dot_dimension_numbers<[1], [0], [0], [1], [0, 0, 1, 1], [], []>, precision = #tpu.contract_precision<fp32>} : vector<8x64xf32>, vector<64x8xf32>, vector<8x8xf32> -> vector<8x8xf32>
    %cst_7 = arith.constant 1.250000e-01 : f32
    %10 = vector.broadcast %cst_7 : f32 to vector<8x8xf32>
    %11 = arith.mulf %9, %10 : vector<8x8xf32>
    %c0_8 = arith.constant 0 : index
    %c0_9 = arith.constant 0 : index
    %12 = vector.load %arg4[%c0_8, %c0_9] : memref<8x8xf32, #tpu.memory_space<vmem>>, vector<8x8xf32>
    tpu.vector_store %arg4[%c0_8, %c0_9], %11 {strides = array<i32>} : memref<8x8xf32, #tpu.memory_space<vmem>>, vector<8x8xf32>,
    return
  }
  func.func @transform_0(%arg0: i32) -> (i32, i32) {
    %c0_i32 = arith.constant 0 : i32
    %c0_i32_0 = arith.constant 0 : i32
    return %arg0, %c0_i32 : i32, i32
  }
  func.func @transform_1(%arg0: i32) -> (i32, i32) {
    %c0_i32 = arith.constant 0 : i32
    %c0_i32_0 = arith.constant 0 : i32
    %c0_i32_1 = arith.constant 0 : i32
    return %c0_i32, %c0_i32_0 : i32, i32
  }
  func.func @transform_2(%arg0: i32) -> (i32, i32) {
    %c0_i32 = arith.constant 0 : i32
    %c0_i32_0 = arith.constant 0 : i32
    %c0_i32_1 = arith.constant 0 : i32
    return %c0_i32, %c0_i32_0 : i32, i32
  }
  func.func @transform_3(%arg0: i32) -> (i32, i32) {
    %c0_i32 = arith.constant 0 : i32
    %c0_i32_0 = arith.constant 0 : i32
    return %arg0, %c0_i32 : i32, i32
  }
}

</mosaic_0001>

<bundles_post_ra>
// kernel: tpu_custom_call.1
= control target key start
LH: loop header
LB: loop body
LE: loop exit
PB: predicated region body
PF: predicated region fallthrough
CT: control target
= control target key end

     0   :  { %8 = vsyncpa [#allocation3], 0  ;;  %v874_v2 = vmov 0.0|0.0   ;;  %vm875_vm0 = vmmov 0   ;;  %v876_v11 = vmov 0.0   ;;  %vm34_vm1 = vcmask 523264   ;;  %s1049_s0 = inlined_call_operand.vmem [shape: f32[1,64], index: 0, kind: input, shape index: {}]   ;;  %s1050_s1 = inlined_call_operand.vmem [shape: f32[1,64], index: 1, kind: input, shape index: {}]   ;;  %s1051_s2 = inlined_call_operand.vmem [shape: f32[64,8], index: 2, kind: input, shape index: {}]   ;;  %s1052_s3 = inlined_call_operand.hbm [shape: f32[1,8], index: 3, kind: output, shape index: {}]  }
   0x1   :  { %v26_v0 = vld [vmem:[%s1051_s2] sm:$0xff]  ;;  %v27_v1 = vld [vmem:[%s1051_s2 + $0x8] sm:$0xff]  ;;  %763 = vmatprep.subr.bf16.mxu1 %v874_v2  ;;  %799 = vmatprep.subr.bf16.mxu0 %v874_v2  ;;  %v28_v5 = vld [vmem:[%s1051_s2 + $0x10] sm:$0xff]  ;;  %vm576_vm2 = vcmask 64512  }
   0x2   :  { %v39_v3 = vand.u32 4294901760, %v26_v0  ;;  %v42_v4 = vand.u32 4294901760, %v27_v1  ;;  %v29_v6 = vld [vmem:[%s1051_s2 + $0x18] sm:$0xff]  ;;  %v45_v7 = vand.u32 4294901760, %v28_v5  ;;  %v30_v9 = vld [vmem:[%s1051_s2 + $0x20] sm:$0xff]  ;;  %v31_v10 = vld [vmem:[%s1051_s2 + $0x28] sm:$0xff]  ;;  %665 = vmatprep.mubr.msk.f32.mxu1 %vm875_vm0, %v876_v11  ;;  %722 = vmatprep.mubr.msk.f32.mxu0 %vm875_vm0, %v876_v11 }
   0x3   :  { %v48_v8 = vand.u32 4294901760, %v29_v6  ;;  %v15_v13 = vld [vmem:[%s1049_s0] sm:$0xff]  ;;  %v51_v18 = vand.u32 4294901760, %v30_v9  ;;  %v54_v19 = vand.u32 4294901760, %v31_v10  ;;  %v32_v20 = vld [vmem:[%s1051_s2 + $0x30] sm:$0xff]  ;;  %v33_v21 = vld [vmem:[%s1051_s2 + $0x38] sm:$0xff] }
   0x4   :  { %v924_v12 = vpack.c.bf16 %v42_v4, %v39_v3  ;;  %v594_v14 = vld [vmem:[%s1050_s1] ss:$0 sm:$0xff]  ;;  %v932_v15 = vsub.f32 %v26_v0, %v39_v3  ;;  %v934_v16 = vsub.f32 %v27_v1, %v42_v4  ;;  %v948_v23 = vsub.f32 %v28_v5, %v45_v7 }
   0x5   :  { %v938_v17 = vpack.c.bf16 %v48_v8, %v45_v7  ;;  %v23_v22 = vmul.f32 %v594_v14, %v15_v13  ;;  %v950_v24 = vsub.f32 %v29_v6, %v48_v8  ;;  %v956_v28 = vpack.c.bf16 %v54_v19, %v51_v18 }
   0x6   :  { %765 = vmatpush3.bf16.msra.mxu1 %v924_v12  ;;  %801 = vmatpush3.bf16.msra.mxu0 %v924_v12  ;;  %v124_v26 = vand.u32 4294901760, %v932_v15  ;;  %v131_v27 = vand.u32 4294901760, %v934_v16  ;;  %v57_v29 = vand.u32 4294901760, %v32_v20  ;;  %v60_v30 = vand.u32 4294901760, %v33_v21 }
   0x7   :  { %766 = vmatprep.subr.bf16.mxu1 %v874_v2  ;;  %802 = vmatprep.subr.bf16.mxu0 %v874_v2  ;;  %v24_v25 = vmax.f32 %v23_v22, 0.0  ;;  %v960_v32 = vsub.f32 %v30_v9, %v51_v18  ;;  %v962_v33 = vsub.f32 %v31_v10, %v54_v19  ;;  %v138_v34 = vand.u32 4294901760, %v948_v23 }
   0x8   :  { %v125_v36 = vsub.f32 %v932_v15, %v124_v26  ;;  %v132_v37 = vsub.f32 %v934_v16, %v131_v27  ;;  %v145_v38 = vand.u32 4294901760, %v950_v24  ;;  %v970_v39 = vpack.c.bf16 %v60_v30, %v57_v29 }
   0x9   :  { %v25_v31 = vmin.f32 %v24_v25, 1.5  ;;  %v976_v41 = vsub.f32 %v32_v20, %v57_v29  ;;  %v978_v42 = vsub.f32 %v33_v21, %v60_v30  ;;  %v139_v44 = vsub.f32 %v948_v23, %v138_v34 }
   0xa   :  { %768 = vmatpush3.bf16.msra.mxu1 %v938_v17  ;;  %804 = vmatpush3.bf16.msra.mxu0 %v938_v17  ;;  %v152_v45 = vand.u32 4294901760, %v960_v32  ;;  %v126_v46 = vand.u32 4294901760, %v125_v36  ;;  %v133_v47 = vand.u32 4294901760, %v132_v37  ;;  %v146_v48 = vsub.f32 %v950_v24, %v145_v38 }
   0xb   :  { %769 = vmatprep.subr.bf16.mxu1 %v874_v2  ;;  %805 = vmatprep.subr.bf16.mxu0 %v874_v2  ;;  %v36_v35 = vsel %vm34_vm1, %v25_v31, 0  ;;  %v159_v49 = vand.u32 4294901760, %v962_v33  ;;  %v812_v51 = vpack.c.bf16 %v131_v27, %v124_v26  ;;  %v140_v53 = vand.u32 4294901760, %v139_v44 }
   0xc   :  { %v972_v40 = vand.u32 4294901760, %v36_v35  ;;  %v153_v54 = vsub.f32 %v960_v32, %v152_v45  ;;  %v166_v55 = vand.u32 4294901760, %v976_v41  ;;  %v776_v56 = vpack.c.bf16 %v133_v47, %v126_v46 }
   0xd   :  { %v147_v57 = vand.u32 4294901760, %v146_v48  ;;  %v160_v58 = vsub.f32 %v962_v33, %v159_v49  ;;  %v173_v59 = vand.u32 4294901760, %v978_v42  ;;  %v815_v61 = vpack.c.bf16 %v145_v38, %v138_v34 }
   0xe   :  { %771 = vmatpush3.bf16.msra.mxu1 %v956_v28  ;;  %807 = vmatpush3.bf16.msra.mxu0 %v956_v28  ;;  %v981_v43 = vsub.f32 %v36_v35, %v972_v40  ;;  %v154_v62 = vand.u32 4294901760, %v153_v54  ;;  %v167_v1 = vsub.f32 %v976_v41, %v166_v55  ;;  %v818_v4 = vpack.c.bf16 %v159_v49, %v152_v45 }
   0xf   :  { %772 = vmatprep.subr.bf16.mxu1 %v874_v2  ;;  %808 = vmatprep.subr.bf16.mxu0 %v874_v2  ;;  %v779_v63 = vpack.c.bf16 %v147_v57, %v140_v53  ;;  %v161_v0 = vand.u32 4294901760, %v160_v58  ;;  %v174_v3 = vsub.f32 %v978_v42, %v173_v59  ;;  %v821_v8 = vpack.c.bf16 %v173_v59, %v166_v55 }
  0x10   :  { %v113_v50 = vand.u32 4294901760, %v981_v43  ;;  %v168_v6 = vand.u32 4294901760, %v167_v1  ;;  %v788_v10 = vpack.c.bf16 %v934_v16, %v932_v15  ;;  %v791_v13 = vpack.c.bf16 %v950_v24, %v948_v23 }
  0x11   :  { %v782_v5 = vpack.c.bf16 %v161_v0, %v154_v62  ;;  %v175_v7 = vand.u32 4294901760, %v174_v3 }
  0x12   :  { %774 = vmatpush3.bf16.msra.mxu1 %v970_v39  ;;  %810 = vmatpush3.bf16.msra.mxu0 %v970_v39  ;;  %v114_v52 = vsub.f32 %v981_v43, %v113_v50 }
  0x13   :  { %775 = vmatprep.subr.bf16.mxu1 %v874_v2  ;;  %811 = vmatprep.subr.bf16.mxu0 %v874_v2  ;;  %v785_v9 = vpack.c.bf16 %v175_v7, %v168_v6 }
  0x14   :  { %v115_v60 = vand.u32 4294901760, %v114_v52 }
  0x15   :  { %723 = vmatmul.mubr.f32.vlgmr.msra.gmra.mrb[0].mxu0 %v113_v50 }
  0x16   :  { %813 = vmatpush3.bf16.msra.mxu0 %v812_v51  ;;  %741 = vmatprep.mubr.msk.f32.mxu0 %vm875_vm0, %v876_v11 }
  0x17   :  { %814 = vmatprep.subr.bf16.mxu0 %v874_v2  ;;  %666 = vmatmul.mubr.f32.vlgmr.msra.gmra.mrb[0].mxu1 %v115_v60 }
  0x18   :  { %777 = vmatpush3.bf16.msra.mxu1 %v776_v56  ;;  %684 = vmatprep.mubr.msk.f32.mxu1 %vm875_vm0, %v876_v11 }
  0x19   :  { %778 = vmatprep.subr.bf16.mxu1 %v874_v2 }
  0x1a   :  { %816 = vmatpush3.bf16.msra.mxu0 %v815_v61 }
  0x1b   :  { %817 = vmatprep.subr.bf16.mxu0 %v874_v2 }
  0x1c   :  { %780 = vmatpush3.bf16.msra.mxu1 %v779_v63 }
  0x1d   :  { %781 = vmatprep.subr.bf16.mxu1 %v874_v2 }
  0x1e   :  { %819 = vmatpush3.bf16.msra.mxu0 %v818_v4 }
  0x1f   :  { %820 = vmatprep.subr.bf16.mxu0 %v874_v2 }
  0x20   :  { %783 = vmatpush3.bf16.msra.mxu1 %v782_v5 }
  0x21   :  { %784 = vmatprep.subr.bf16.mxu1 %v874_v2 }
  0x22   :  { %822 = vmatpush3.bf16.msra.mxu0 %v821_v8 }
  0x23   :  { %823 = vmatprep.subr.bf16.mxu0 %v874_v2 }
  0x24   :  { %786 = vmatpush3.bf16.msra.mxu1 %v785_v9 }
  0x25   :  { %742 = vmatmul.mubr.f32.vlgmr.msra.gmra.mrb[0].mxu0 %v972_v40  ;;  %787 = vmatprep.subr.bf16.mxu1 %v874_v2 }
  0x26   :  { %825 = vmatpush3.bf16.msra.mxu0 %v924_v12  ;;  %760 = vmatprep.mubr.msk.f32.mxu0 %vm875_vm0, %v876_v11  ;;  %v794_v12 = vpack.c.bf16 %v962_v33, %v960_v32 }
  0x27   :  { %826 = vmatprep.subr.bf16.mxu0 %v874_v2  ;;  %685 = vmatmul.mubr.f32.vlgmr.msra.gmra.mrb[0].mxu1 %v972_v40 }
  0x28   :  { %789 = vmatpush3.bf16.msra.mxu1 %v788_v10  ;;  %703 = vmatprep.mubr.msk.f32.mxu1 %vm875_vm0, %v876_v11  ;;  %v797_v11 = vpack.c.bf16 %v978_v42, %v976_v41 }
  0x29   :  { %790 = vmatprep.subr.bf16.mxu1 %v874_v2 }
  0x2a   :  { %828 = vmatpush3.bf16.msra.mxu0 %v938_v17 }
  0x2b   :  { %829 = vmatprep.subr.bf16.mxu0 %v874_v2 }
  0x2c   :  { %792 = vmatpush3.bf16.msra.mxu1 %v791_v13 }
  0x2d   :  { %793 = vmatprep.subr.bf16.mxu1 %v874_v2 }
  0x2e   :  { %831 = vmatpush3.bf16.msra.mxu0 %v956_v28 }
  0x2f   :  { %832 = vmatprep.subr.bf16.mxu0 %v874_v2 }
  0x30   :  { %795 = vmatpush3.bf16.msra.mxu1 %v794_v12 }
  0x31   :  { %796 = vmatprep.subr.bf16.mxu1 %v874_v2 }
  0x32   :  { %834 = vmatpush3.bf16.msra.mxu0 %v970_v39 }
  0x34   :  { %798 = vmatpush3.bf16.msra.mxu1 %v797_v11 }
  0x35   :  { %761 = vmatmul.mubr.f32.vlgmr.msra.gmra.mrb[0].mxu0 %v972_v40 }
  0x37   :  { %704 = vmatmul.mubr.f32.vlgmr.msra.gmra.mrb[0].mxu1 %v981_v43 }
 0x108   :  { %v571_v14 = vpop.f32.mrb[0].mxu0 }
 0x109   :  { %v762_v15 = vpop.f32.mrb[1].mxu0 }
 0x10a   :  { %v316_v16 = vpop.f32.mrb[0].mxu1 }
 0x10b   :  { %v835_v17 = vadd.f32 %v571_v14, %v316_v16  ;;  %v705_v18 = vpop.f32.mrb[1].mxu1 }
 0x10d   :  { %v575_v19 = vmul.f32 0.125, %v835_v17 }
 0x10f   :  { %577 = vst.msk [vmem:[#allocation2] sm:$0xff] %vm576_vm2, %v575_v19 }
 0x110   :  { %582 = vsyncadd [#allocation3], 112  ;;  %s877_s2 = smov [#allocation2]  }
 0x111   :  { %s583_s30 = sshll.u32 %s877_s2, 4  ;;  %s584_s30 = int_to_ptr.vmem [resolvable:$true] %s583_s30 }
 0x112   :  { %s850_s4 = scalar_lea.vmem %s584_s30, 16  ;;  %s854_s5 = scalar_lea.vmem %s584_s30, 128 }
 0x113   :  { %p851_p0 = scmp.ne.s32.totalorder %s584_s30, %s850_s4  ;;  %p855_p1 = scmp.lt.s32.totalorder %s584_s30, %s584_s30 }
 0x114   :  { %p856_p2 = scmp.lt.s32.totalorder %s854_s5, %s850_s4 }
 0x116   :  { %p857_p3 = por %p856_p2, %p855_p1 }
 0x118   :  { %p858_p4 = pnand %p857_p3, %p851_p0 }
 0x11a   :  { %861 = shalt.err (!%p858_p4)
}
 0x11b   :  { %s862_s8 = scalar_lea.hbm %s1052_s3, 16 }
 0x11c   :  { %p863_p5 = scmp.ne.s32.totalorder %s1052_s3, %s862_s8  ;;  %p866_p6 = scmp.lt.u32.totalorder %s862_s8, %s1052_s3 }
 0x11e   :  { %p868_p7 = pnand %p866_p6, %p863_p5 }
 0x120   :  { %871 = shalt.err (!%p868_p7)
}
 0x121   :  { %s878_s13 = smov 16   ;;  %s879_s14 = smov 1  }
 0x122   :  { %589 = dma.vmem_to_hbm [thread:$0]  %s584_s30, 16, %s1052_s3, [#allocation3], %s878_s13, %s878_s13, %s879_s14  }
 0x123   :  { %872 = dma.done.wait [#allocation3], 128  }
 0x124   :  { %873 = vsyncadd [#allocation3], 4294967168 }
 0x125   :  { %593 = vsyncpa [#allocation3], 1 }

</bundles_post_ra>
